<compile_context>
chip_gen: v7x
topology: tpu7x:2x2x1
jax: 0.10.0
libtpu: 0.0.40
codegen_flags: <defaults>
</compile_context>

<pallas_src>
import functools

import jax
import jax.numpy as jnp
from jax.experimental import pallas as pl
from jax.experimental.pallas import tpu as pltpu


def _vmem_capacity_bytes():
    """Physical VMEM per TensorCore (64 MiB on v7x, 128 MiB on v5e/v6e)."""
    try:
        cap = getattr(pltpu.get_tpu_info(), "vmem_capacity_bytes", None)
        if cap:
            return int(cap)
    except Exception:
        pass
    return 64 * 1024 * 1024  # conservative (v7x-sized) default


def _conv1d_bn_relu_kernel(x_ref, w_ref, b_ref, o_ref, *, with_relu, bb):
    """One grid step = (Bb batch elements, one N-tile).

    x_ref : (Bb, Cin, TN)   input tile, points on the lane axis (lane-dense)
    w_ref : (Cout, Cin)     folded Conv1d(1x1)+BN weight, resident across grid
    b_ref : (Cout, 1)       folded bias (f32)
    o_ref : (Bb, Cout, TN)  output tile (lane-dense, no transpose needed)
    """
    w = w_ref[...]
    b = b_ref[...]
    for i in range(bb):  # static unroll over the batch block
        y = jnp.dot(w, x_ref[i], preferred_element_type=jnp.float32)
        y = y + b
        if with_relu:
            y = jnp.maximum(y, 0.0)
        o_ref[i] = y.astype(o_ref.dtype)


def _select_tiling(B, Cin, Cout, N, x_bytes, w_bytes, out_bytes, vmem_budget):
    """Pick (Bb, TN) = (batch elements per block, point-tile size)."""
    # Resident folded weight + bias (conservatively assume the fallback path,
    # which double-buffers them).
    resident = 2 * (Cout * Cin * w_bytes + Cout * 4)

    def footprint(bb, tn):
        # Double-buffered x and out tiles + resident weights.
        return 2 * bb * tn * (Cin * x_bytes + Cout * out_bytes) + resident

    # Point-axis tile: lane-dense (multiple of 128) and as large as the VMEM
    # budget allows -- the kernel is HBM-bandwidth bound, so bigger tiles
    # amortize the per-step overhead and keep DMAs long.
    if N <= 128:
        tn = N  # full (possibly ragged) dim is always legal
    else:
        tn = min(2048, (N // 128) * 128)
        while tn > 128 and footprint(1, tn) > vmem_budget:
            tn -= 128
        if B == 1:
            # v7x has 2 TensorCores: keep >= 2 grid steps when the batch axis
            # can't provide them.
            while tn > 128 and pl.cdiv(N, tn) < 2:
                tn -= 128
    n_tiles = pl.cdiv(N, tn)

    # Batch block: for small-N workloads a single (Cin, TN) slab is only a few
    # KiB, so group batch elements per step; never collapse the grid below 2
    # steps (v7x needs work for both cores) and never exceed the VMEM budget.
    def step_bytes(bb):
        return bb * tn * (Cin * x_bytes + Cout * out_bytes)

    bb = 1
    if B > 1:
        for d in range(2, B + 1):
            if B % d != 0:
                continue
            if (B // d) * n_tiles < 2:
                continue
            if footprint(d, tn) > vmem_budget:
                continue
            bb = d
            if step_bytes(bb) >= (512 << 10):
                break
    return bb, tn


def conv1d_forward(x, w_folded, b_folded, *, with_relu=True,
                   compute_dtype=jnp.bfloat16, out_dtype=jnp.float32):
    """Pallas implementation of Conv1D.forward (BN folded, inference mode).

    x        : (B, Cin, N) float32
    w_folded : (Cout, Cin) float32   -- Conv1d(1x1) weight with BN folded in
    b_folded : (Cout,)     float32   -- Conv1d bias with BN folded in
    returns  : (B, Cout, N) out_dtype (float32 by default)
    """
    B, Cin, N = x.shape
    Cout = w_folded.shape[0]

    x_bytes = jnp.dtype(compute_dtype).itemsize
    w_bytes = x_bytes
    out_bytes = jnp.dtype(out_dtype).itemsize

    cap = _vmem_capacity_bytes()
    vmem_budget = int(cap * 0.70)  # ~45 MiB on v7x, ~90 MiB on v5e/v6e

    Bb, TN = _select_tiling(B, Cin, Cout, N, x_bytes, w_bytes, out_bytes,
                            vmem_budget)

    # Footprint (conservative: assumes double-buffered weights) -> VMEM limit.
    foot = (2 * Bb * TN * (Cin * x_bytes + Cout * out_bytes)
            + 2 * (Cout * Cin * w_bytes + Cout * 4))
    vmem_limit = int(min(cap - (4 << 20), max(2 * foot + (8 << 20), 64 << 20)))

    xc = x.astype(compute_dtype)
    wc = w_folded.astype(compute_dtype)
    b2 = b_folded.astype(jnp.float32).reshape(Cout, 1)

    grid = (B // Bb, pl.cdiv(N, TN))

    flops = 2 * B * Cout * Cin * N
    bytes_accessed = (B * Cin * N * x_bytes + B * Cout * N * out_bytes
                      + Cout * Cin * w_bytes + Cout * 4)

    kernel = functools.partial(_conv1d_bn_relu_kernel,
                               with_relu=with_relu, bb=Bb)

    def build(single_buffer_weights):
        resident_kwargs = (
            dict(pipeline_mode=pl.Buffered(buffer_count=1))
            if single_buffer_weights else {})
        return pl.pallas_call(
            kernel,
            out_shape=jax.ShapeDtypeStruct((B, Cout, N), out_dtype),
            grid_spec=pltpu.PrefetchScalarGridSpec(
                num_scalar_prefetch=0,
                grid=grid,
                in_specs=[
                    pl.BlockSpec((Bb, Cin, TN), lambda bi, ni: (bi, 0, ni)),
                    # Constant index maps -> weight/bias stay resident in VMEM;
                    # Buffered(1) skips the (never used) second buffer.
                    pl.BlockSpec((Cout, Cin), lambda bi, ni: (0, 0),
                                 **resident_kwargs),
                    pl.BlockSpec((Cout, 1), lambda bi, ni: (0, 0),
                                 **resident_kwargs),
                ],
                out_specs=pl.BlockSpec((Bb, Cout, TN),
                                       lambda bi, ni: (bi, 0, ni)),
            ),
            compiler_params=pltpu.CompilerParams(
                dimension_semantics=("parallel", "parallel"),
                vmem_limit_bytes=vmem_limit,
            ),
            cost_estimate=pl.CostEstimate(
                flops=flops, transcendentals=0, bytes_accessed=bytes_accessed),
        )

    try:
        return build(True)(xc, wc, b2)
    except Exception:
        # Some Pallas versions reject Buffered(1) on pipelined inputs; fall
        # back to the default double-buffered spec (costs Cout*Cin*w_bytes of
        # extra VMEM only).
        return build(False)(xc, wc, b2)


def fold_conv_bn(conv_w, conv_b, gamma, beta, mu, var, eps=1e-5):
    """Fold inference-mode BatchNorm1d into a 1x1 Conv1d.

    conv_w : (Cout, Cin, 1)  PyTorch Conv1d weight layout
    conv_b : (Cout,)
    returns (w_folded (Cout, Cin), b_folded (Cout,))
    """
    w = conv_w[:, :, 0]                                   # (Cout, Cin)
    scale = gamma / jnp.sqrt(var + eps)
    w_f = w * scale[:, None]
    b_f = (conv_b - mu) * scale + beta
    return w_f, b_f
    # TODO(synk): training-mode BatchNorm (batch statistics + running-stat
    # updates) is not reproduced; BN is applied in inference mode.


def _reference_forward(x, conv_w, conv_b, gamma, beta, mu, var, eps=1e-5,
                       with_bn=True, with_relu=True):
    """Pure-JAX reference of Conv1D.forward (unfolded conv -> BN -> relu)."""
    y = jnp.einsum("oc,bcn->bon", conv_w[:, :, 0], x) + conv_b[None, :, None]
    if with_bn:
        y = (y - mu[None, :, None]) / jnp.sqrt(var[None, :, None] + eps)
        y = y * gamma[None, :, None] + beta[None, :, None]
    if with_relu:
        y = jnp.maximum(y, 0.0)
    return y


if __name__ == "__main__":
    # Small shapes consistent with the module: x = (B, C, N).
    B, Cin, N, Cout = 2, 4, 16, 32

    key = jax.random.PRNGKey(0)
    kx, kw, kb, kg, kbe, km, kv = jax.random.split(key, 7)

    x = jax.random.normal(kx, (B, Cin, N), jnp.float32)

    # Synthetic Conv1d(1x1) + BatchNorm1d (eval mode) parameters.
    conv_w = jax.random.normal(kw, (Cout, Cin, 1), jnp.float32) * 0.1
    conv_b = jax.random.normal(kb, (Cout,), jnp.float32) * 0.1
    gamma = jax.random.uniform(kg, (Cout,), jnp.float32, 0.5, 1.5)
    beta = jax.random.normal(kbe, (Cout,), jnp.float32) * 0.1
    mu = jax.random.normal(km, (Cout,), jnp.float32) * 0.1
    var = jax.random.uniform(kv, (Cout,), jnp.float32, 0.5, 1.5)

    w_f, b_f = fold_conv_bn(conv_w, conv_b, gamma, beta, mu, var)

    y = conv1d_forward(x, w_f, b_f, with_relu=True)
    y = jax.block_until_ready(y)

    y_ref = _reference_forward(x, conv_w, conv_b, gamma, beta, mu, var,
                               with_bn=True, with_relu=True)
    assert y.shape == (B, Cout, N), y.shape
    assert y.dtype == jnp.float32, y.dtype
    # bf16 inputs on the MXU (f32 accumulation): slightly looser tolerance
    # than the pure-f32 path.
    assert jnp.allclose(y, y_ref, atol=2e-2, rtol=2e-2), "mismatch vs reference"

    print("KERNEL_OK")
</pallas_src>

<mosaic_0001>
module attributes {stable_mosaic.version = 11 : i64} {
  func.func @_conv1d_bn_relu_kernel(%arg0: i32, %arg1: i32, %arg2: memref<1x4x16xbf16, #tpu.memory_space<vmem>>, %arg3: memref<32x4xbf16, #tpu.memory_space<vmem>>, %arg4: memref<32x1xf32, #tpu.memory_space<vmem>>, %arg5: memref<1x32x16xf32, #tpu.memory_space<vmem>>) attributes {dimension_semantics = [#tpu.dimension_semantics<parallel>, #tpu.dimension_semantics<parallel>], iteration_bounds = array<i64: 2, 1>, scalar_prefetch = 0 : i64, scratch_operands = 0 : i64, tpu.core_type = #tpu.core_type<tc>, window_params = [{transform_indices = @transform_0, window_bounds = array<i64: 1, 4, 16>}, {pipeline_mode = #tpu.pipeline_mode<synchronous>, transform_indices = @transform_1, window_bounds = array<i64: 32, 4>}, {pipeline_mode = #tpu.pipeline_mode<synchronous>, transform_indices = @transform_2, window_bounds = array<i64: 32, 1>}, {transform_indices = @transform_3, window_bounds = array<i64: 1, 32, 16>}]} {
    %c0 = arith.constant 0 : index
    %c0_0 = arith.constant 0 : index
    %0 = vector.load %arg3[%c0, %c0_0] : memref<32x4xbf16, #tpu.memory_space<vmem>>, vector<32x4xbf16>
    %c0_1 = arith.constant 0 : index
    %c0_2 = arith.constant 0 : index
    %1 = vector.load %arg4[%c0_1, %c0_2] : memref<32x1xf32, #tpu.memory_space<vmem>>, vector<32x1xf32>
    %c0_3 = arith.constant 0 : index
    %c0_4 = arith.constant 0 : index
    %c0_5 = arith.constant 0 : index
    %2 = vector.load %arg2[%c0_3, %c0_4, %c0_5] : memref<1x4x16xbf16, #tpu.memory_space<vmem>>, vector<1x4x16xbf16>
    %3 = vector.shape_cast %2 : vector<1x4x16xbf16> to vector<4x16xbf16>
    %cst = arith.constant dense<0.000000e+00> : vector<32x16xf32>
    %4 = tpu.matmul %0, %3, %cst {dimension_numbers = #tpu.dot_dimension_numbers<[1], [0], [0], [1], [0, 0, 1, 1], [], []>} : vector<32x4xbf16>, vector<4x16xbf16>, vector<32x16xf32> -> vector<32x16xf32>
    %5 = vector.broadcast %1 : vector<32x1xf32> to vector<32x16xf32>
    %6 = arith.addf %4, %5 : vector<32x16xf32>
    %cst_6 = arith.constant 0.000000e+00 : f32
    %7 = vector.broadcast %cst_6 : f32 to vector<32x16xf32>
    %8 = arith.maximumf %6, %7 : vector<32x16xf32>
    %c0_7 = arith.constant 0 : index
    %c0_8 = arith.constant 0 : index
    %c0_9 = arith.constant 0 : index
    %9 = vector.load %arg5[%c0_7, %c0_8, %c0_9] : memref<1x32x16xf32, #tpu.memory_space<vmem>>, vector<1x32x16xf32>
    %10 = vector.shape_cast %9 : vector<1x32x16xf32> to vector<32x16xf32>
    %11 = vector.shape_cast %8 : vector<32x16xf32> to vector<1x32x16xf32>
    tpu.vector_store %arg5[%c0_7, %c0_8, %c0_9], %11 {strides = array<i32>} : memref<1x32x16xf32, #tpu.memory_space<vmem>>, vector<1x32x16xf32>,
    return
  }
  func.func @transform_0(%arg0: i32, %arg1: i32) -> (i32, i32, i32) {
    %c0_i32 = arith.constant 0 : i32
    %c0_i32_0 = arith.constant 0 : i32
    return %arg0, %c0_i32, %arg1 : i32, i32, i32
  }
  func.func @transform_1(%arg0: i32, %arg1: i32) -> (i32, i32) {
    %c0_i32 = arith.constant 0 : i32
    %c0_i32_0 = arith.constant 0 : i32
    %c0_i32_1 = arith.constant 0 : i32
    return %c0_i32, %c0_i32_0 : i32, i32
  }
  func.func @transform_2(%arg0: i32, %arg1: i32) -> (i32, i32) {
    %c0_i32 = arith.constant 0 : i32
    %c0_i32_0 = arith.constant 0 : i32
    %c0_i32_1 = arith.constant 0 : i32
    return %c0_i32, %c0_i32_0 : i32, i32
  }
  func.func @transform_3(%arg0: i32, %arg1: i32) -> (i32, i32, i32) {
    %c0_i32 = arith.constant 0 : i32
    %c0_i32_0 = arith.constant 0 : i32
    return %arg0, %c0_i32, %arg1 : i32, i32, i32
  }
}

module attributes {stable_mosaic.version = 11 : i64} {
  func.func @_conv1d_bn_relu_kernel(%arg0: i32, %arg1: i32, %arg2: memref<1x4x16xbf16, #tpu.memory_space<vmem>>, %arg3: memref<32x4xbf16, #tpu.memory_space<vmem>>, %arg4: memref<32x1xf32, #tpu.memory_space<vmem>>, %arg5: memref<1x32x16xf32, #tpu.memory_space<vmem>>) attributes {dimension_semantics = [#tpu.dimension_semantics<parallel>, #tpu.dimension_semantics<parallel>], iteration_bounds = array<i64: 2, 1>, scalar_prefetch = 0 : i64, scratch_operands = 0 : i64, tpu.core_type = #tpu.core_type<tc>, window_params = [{transform_indices = @transform_0, window_bounds = array<i64: 1, 4, 16>}, {pipeline_mode = #tpu.pipeline_mode<synchronous>, transform_indices = @transform_1, window_bounds = array<i64: 32, 4>}, {pipeline_mode = #tpu.pipeline_mode<synchronous>, transform_indices = @transform_2, window_bounds = array<i64: 32, 1>}, {transform_indices = @transform_3, window_bounds = array<i64: 1, 32, 16>}]} {
    %c0 = arith.constant 0 : index
    %c0_0 = arith.constant 0 : index
    %0 = vector.load %arg3[%c0, %c0_0] : memref<32x4xbf16, #tpu.memory_space<vmem>>, vector<32x4xbf16>
    %c0_1 = arith.constant 0 : index
    %c0_2 = arith.constant 0 : index
    %1 = vector.load %arg4[%c0_1, %c0_2] : memref<32x1xf32, #tpu.memory_space<vmem>>, vector<32x1xf32>
    %c0_3 = arith.constant 0 : index
    %c0_4 = arith.constant 0 : index
    %c0_5 = arith.constant 0 : index
    %2 = vector.load %arg2[%c0_3, %c0_4, %c0_5] : memref<1x4x16xbf16, #tpu.memory_space<vmem>>, vector<1x4x16xbf16>
    %3 = vector.shape_cast %2 : vector<1x4x16xbf16> to vector<4x16xbf16>
    %cst = arith.constant dense<0.000000e+00> : vector<32x16xf32>
    %4 = tpu.matmul %0, %3, %cst {dimension_numbers = #tpu.dot_dimension_numbers<[1], [0], [0], [1], [0, 0, 1, 1], [], []>} : vector<32x4xbf16>, vector<4x16xbf16>, vector<32x16xf32> -> vector<32x16xf32>
    %5 = vector.broadcast %1 : vector<32x1xf32> to vector<32x16xf32>
    %6 = arith.addf %4, %5 : vector<32x16xf32>
    %cst_6 = arith.constant 0.000000e+00 : f32
    %7 = vector.broadcast %cst_6 : f32 to vector<32x16xf32>
    %8 = arith.maximumf %6, %7 : vector<32x16xf32>
    %c0_7 = arith.constant 0 : index
    %c0_8 = arith.constant 0 : index
    %c0_9 = arith.constant 0 : index
    %9 = vector.load %arg5[%c0_7, %c0_8, %c0_9] : memref<1x32x16xf32, #tpu.memory_space<vmem>>, vector<1x32x16xf32>
    %10 = vector.shape_cast %9 : vector<1x32x16xf32> to vector<32x16xf32>
    %11 = vector.shape_cast %8 : vector<32x16xf32> to vector<1x32x16xf32>
    tpu.vector_store %arg5[%c0_7, %c0_8, %c0_9], %11 {strides = array<i32>} : memref<1x32x16xf32, #tpu.memory_space<vmem>>, vector<1x32x16xf32>,
    return
  }
  func.func @transform_0(%arg0: i32, %arg1: i32) -> (i32, i32, i32) {
    %c0_i32 = arith.constant 0 : i32
    %c0_i32_0 = arith.constant 0 : i32
    return %arg0, %c0_i32, %arg1 : i32, i32, i32
  }
  func.func @transform_1(%arg0: i32, %arg1: i32) -> (i32, i32) {
    %c0_i32 = arith.constant 0 : i32
    %c0_i32_0 = arith.constant 0 : i32
    %c0_i32_1 = arith.constant 0 : i32
    return %c0_i32, %c0_i32_0 : i32, i32
  }
  func.func @transform_2(%arg0: i32, %arg1: i32) -> (i32, i32) {
    %c0_i32 = arith.constant 0 : i32
    %c0_i32_0 = arith.constant 0 : i32
    %c0_i32_1 = arith.constant 0 : i32
    return %c0_i32, %c0_i32_0 : i32, i32
  }
  func.func @transform_3(%arg0: i32, %arg1: i32) -> (i32, i32, i32) {
    %c0_i32 = arith.constant 0 : i32
    %c0_i32_0 = arith.constant 0 : i32
    return %arg0, %c0_i32, %arg1 : i32, i32, i32
  }
}

</mosaic_0001>

<bundles_post_ra>
// kernel: tpu_custom_call.1
= control target key start
LH: loop header
LB: loop body
LE: loop exit
PB: predicated region body
PF: predicated region fallthrough
CT: control target
= control target key end

     0   :  { %s487_s12 = smov 0   ;;  %s489_s13 = smov 0   ;;  %s544_s0 = inlined_call_operand.vmem [shape: bf16[2,4,16], index: 0, kind: input, shape index: {}]   ;;  %s545_s1 = inlined_call_operand.vmem [shape: bf16[32,4], index: 1, kind: input, shape index: {}]   ;;  %s546_s2 = inlined_call_operand.vmem [shape: f32[32,1], index: 2, kind: input, shape index: {}]   ;;  %s547_s3 = inlined_call_operand.vmem [shape: f32[2,32,16], index: 3, kind: output, shape index: {}]  }
   0x1   :  { %s491_s14 = smov 0  }
   0x2 LB: > { %s25_s15 = sadd.s32 1, %s460_s13  ;;  %p392_p0 = scmp.ge.s32.totalorder %s464_s14, 1  ;;  %s464_s14 = sphi %s491_s14, %s13_s14   ;;  %s460_s13 = sphi %s489_s13, %s549_s13   ;;  %s456_s12 = sphi %s487_s12, %s548_s12  }
   0x3   : > { %p27_p1 = scmp.ge.s32.totalorder %s25_s15, 2  ;;  %p155_p2 = scmp.lt.s32.totalorder %s464_s14, 3 }
   0x5   : > { %s551_s15 = smov (%p27_p1, %s25_s15), 0  ;;  %p156_p3 = pnand %p392_p0, %p155_p2 }
   0x6   : > { %p184_p4 = scmp.lt.s32.totalorder (!%p156_p3), %s456_s12, 1  ;;  %v440_v0 = vld [vmem:[%s545_s1] sm:$0xff] (!%p156_p3)   ;;  %vm239_vm0 = vcmask (!%p156_p3), 31744   ;;  %v206_v1 = vld [vmem:[%s546_s2 + $0x10] sm:$0xff] (!%p156_p3)  ;;  %v466_v3 = vmov (!%p156_p3), 0   ;;  %vm246_vm1 = vcmask (!%p156_p3), 1041408  }
   0x7   : > { %159 = sbr.rel (%p156_p3) target bundleno = 242 (0xf2), region = 32  ;;  %v204_v2 = vld [vmem:[%s546_s2] sm:$0xff] (!%p156_p3)  ;;  %408 = vmatprep.mubr.msk.bf16.mxu0 (!%p156_p3), %vm239_vm0, %v440_v0  ;;  %439 = vset.pattern.permute.xlu1 (!%p156_p3), %v466_v3  ;;  %v207_v4 = vld [vmem:[%s546_s2 + $0x18] sm:$0xff] (!%p156_p3)  ;;  %v205_v6 = vld [vmem:[%s546_s2 + $0x8] sm:$0xff] (!%p156_p3)  ;;  %vm303_vm2 = vcmask (!%p156_p3), 130048  }
   0x8   : > { %438 = vset.pattern.permute.xlu0 (!%p156_p3), %v466_v3  ;;  %221 = vperm.xlu1 (!%p156_p3), %439, %v206_v1   ;;  %v441_v8 = vld [vmem:[%s545_s1 + $0x8] sm:$0xff] (!%p156_p3)  }
   0x9   : > { %211 = vperm.xlu0 (!%p156_p3), %438, %v204_v2  }
   0xc   : > { %226 = vperm.xlu1 (!%p156_p3), %439, %v207_v4  }
   0xd   : > { %216 = vperm.xlu0 (!%p156_p3), %438, %v205_v6  }
   0xe   : > { %s553_s12 = smov (!%p184_p4, %s456_s12), 1 }
   0xf   : > { %s393_s22 = sshll.u32 %s553_s12, 1  ;;  %s402_s5 = sshll.u32 %s553_s12, 5 }
  0x10   : > { %s190_s25 = scalar_lea.vmem %s544_s0, %s393_s22  ;;  %s198_s8 = scalar_lea.vmem %s547_s3, %s402_s5 }
  0x11   : > { %v208_v5 = vld [vmem:[%s190_s25] sm:$0x3] }
  0x12   : > { %412 = vmatprep.subr.msk.bf16.mxu0 %vm246_vm1, %v208_v5  ;;  %v248_v7 = vsel %vm246_vm1, %v208_v5, 0 }
  0x13   : > { %407 = vmatpush3.bf16.msra.mxu0 %v248_v7 }
  0x16   : > { %409 = vmatmul.mubr.msk.bf16.vlgmr.msra.gmra.mrb[0].mxu0 %vm239_vm0, %v441_v8 }
  0x87   : > { %v222_v9 = vpop.permute.xlu1 %221 }
  0x88   : > { %v212_v10 = vpop.permute.xlu0 %211 }
  0x8b   : > { %v227_v14 = vpop.permute.xlu1 %226 }
  0x8c   : > { %v217_v17 = vpop.permute.xlu0 %216 }
  0xe9   : > { %v410_v11 = vpop.f32.mrb[0].mxu0 }
  0xea   : > { %v293_v12 = vadd.f32 %v410_v11, %v222_v9  ;;  %v284_v13 = vpop.f32.mrb[1].mxu0 }
  0xeb   : > { %v285_v15 = vadd.f32 %v284_v13, %v212_v10  ;;  %v411_v16 = vpop.f32.mrb[2].mxu0 }
  0xec   : > { %v301_v18 = vmax.f32 %v293_v12, 0.0  ;;  %v296_v19 = vadd.f32 %v411_v16, %v227_v14  ;;  %v287_v20 = vpop.f32.mrb[3].mxu0 }
  0xed   : > { %v299_v21 = vmax.f32 %v285_v15, 0.0  ;;  %v288_v22 = vadd.f32 %v287_v20, %v217_v17 }
  0xee   : > { %306 = vst.msk [vmem:[%s198_s8 + $0x10] sm:$0xff] %vm303_vm2, %v301_v18  ;;  %v302_v23 = vmax.f32 %v296_v19, 0.0 }
  0xef   : > { %304 = vst.msk [vmem:[%s198_s8] sm:$0xff] %vm303_vm2, %v299_v21  ;;  %v300_v24 = vmax.f32 %v288_v22, 0.0 }
  0xf0   : > { %307 = vst.msk [vmem:[%s198_s8 + $0x18] sm:$0xff] %vm303_vm2, %v302_v23 }
  0xf1   : > { %305 = vst.msk [vmem:[%s198_s8 + $0x8] sm:$0xff] %vm303_vm2, %v300_v24 }
  0xf2 PF: > { %s13_s14 = sadd.s32 1, %s464_s14   ;;  %s548_s12 = smov %s460_s13 }
  0xf3   : > { %p10_p5 = scmp.ge.s32.totalorder %s13_s14, 4   ;;  %s549_s13 = smov %s551_s15 }
  0xf5   :  { %12 = sbr.rel (!%p10_p5) target bundleno = 2 (0x2), region = 62 }

// kernel: tpu_custom_call.1
= control target key start
LH: loop header
LB: loop body
LE: loop exit
PB: predicated region body
PF: predicated region fallthrough
CT: control target
= control target key end

     0   :  { %s487_s12 = smov 0   ;;  %s489_s13 = smov 0   ;;  %s544_s0 = inlined_call_operand.vmem [shape: bf16[2,4,16], index: 0, kind: input, shape index: {}]   ;;  %s545_s1 = inlined_call_operand.vmem [shape: bf16[32,4], index: 1, kind: input, shape index: {}]   ;;  %s546_s2 = inlined_call_operand.vmem [shape: f32[32,1], index: 2, kind: input, shape index: {}]   ;;  %s547_s3 = inlined_call_operand.vmem [shape: f32[2,32,16], index: 3, kind: output, shape index: {}]  }
   0x1   :  { %s491_s14 = smov 0  }
   0x2 LB: > { %s25_s15 = sadd.s32 1, %s460_s13  ;;  %p392_p0 = scmp.ge.s32.totalorder %s464_s14, 1  ;;  %s464_s14 = sphi %s491_s14, %s13_s14   ;;  %s460_s13 = sphi %s489_s13, %s549_s13   ;;  %s456_s12 = sphi %s487_s12, %s548_s12  }
   0x3   : > { %p27_p1 = scmp.ge.s32.totalorder %s25_s15, 2  ;;  %p155_p2 = scmp.lt.s32.totalorder %s464_s14, 3 }
   0x5   : > { %s551_s15 = smov (%p27_p1, %s25_s15), 0  ;;  %p156_p3 = pnand %p392_p0, %p155_p2 }
   0x6   : > { %p184_p4 = scmp.lt.s32.totalorder (!%p156_p3), %s456_s12, 1  ;;  %v440_v0 = vld [vmem:[%s545_s1] sm:$0xff] (!%p156_p3)   ;;  %vm239_vm0 = vcmask (!%p156_p3), 31744   ;;  %v206_v1 = vld [vmem:[%s546_s2 + $0x10] sm:$0xff] (!%p156_p3)  ;;  %v466_v3 = vmov (!%p156_p3), 0   ;;  %vm246_vm1 = vcmask (!%p156_p3), 1041408  }
   0x7   : > { %159 = sbr.rel (%p156_p3) target bundleno = 242 (0xf2), region = 32  ;;  %v204_v2 = vld [vmem:[%s546_s2] sm:$0xff] (!%p156_p3)  ;;  %408 = vmatprep.mubr.msk.bf16.mxu0 (!%p156_p3), %vm239_vm0, %v440_v0  ;;  %439 = vset.pattern.permute.xlu1 (!%p156_p3), %v466_v3  ;;  %v207_v4 = vld [vmem:[%s546_s2 + $0x18] sm:$0xff] (!%p156_p3)  ;;  %v205_v6 = vld [vmem:[%s546_s2 + $0x8] sm:$0xff] (!%p156_p3)  ;;  %vm303_vm2 = vcmask (!%p156_p3), 130048  }
   0x8   : > { %438 = vset.pattern.permute.xlu0 (!%p156_p3), %v466_v3  ;;  %221 = vperm.xlu1 (!%p156_p3), %439, %v206_v1   ;;  %v441_v8 = vld [vmem:[%s545_s1 + $0x8] sm:$0xff] (!%p156_p3)  }
   0x9   : > { %211 = vperm.xlu0 (!%p156_p3), %438, %v204_v2  }
   0xc   : > { %226 = vperm.xlu1 (!%p156_p3), %439, %v207_v4  }
   0xd   : > { %216 = vperm.xlu0 (!%p156_p3), %438, %v205_v6  }
   0xe   : > { %s553_s12 = smov (!%p184_p4, %s456_s12), 1 }
   0xf   : > { %s393_s22 = sshll.u32 %s553_s12, 1  ;;  %s402_s5 = sshll.u32 %s553_s12, 5 }
  0x10   : > { %s190_s25 = scalar_lea.vmem %s544_s0, %s393_s22  ;;  %s198_s8 = scalar_lea.vmem %s547_s3, %s402_s5 }
  0x11   : > { %v208_v5 = vld [vmem:[%s190_s25] sm:$0x3] }
  0x12   : > { %412 = vmatprep.subr.msk.bf16.mxu0 %vm246_vm1, %v208_v5  ;;  %v248_v7 = vsel %vm246_vm1, %v208_v5, 0 }
  0x13   : > { %407 = vmatpush3.bf16.msra.mxu0 %v248_v7 }
  0x16   : > { %409 = vmatmul.mubr.msk.bf16.vlgmr.msra.gmra.mrb[0].mxu0 %vm239_vm0, %v441_v8 }
  0x87   : > { %v222_v9 = vpop.permute.xlu1 %221 }
  0x88   : > { %v212_v10 = vpop.permute.xlu0 %211 }
  0x8b   : > { %v227_v14 = vpop.permute.xlu1 %226 }
  0x8c   : > { %v217_v17 = vpop.permute.xlu0 %216 }
  0xe9   : > { %v410_v11 = vpop.f32.mrb[0].mxu0 }
  0xea   : > { %v293_v12 = vadd.f32 %v410_v11, %v222_v9  ;;  %v284_v13 = vpop.f32.mrb[1].mxu0 }
  0xeb   : > { %v285_v15 = vadd.f32 %v284_v13, %v212_v10  ;;  %v411_v16 = vpop.f32.mrb[2].mxu0 }
  0xec   : > { %v301_v18 = vmax.f32 %v293_v12, 0.0  ;;  %v296_v19 = vadd.f32 %v411_v16, %v227_v14  ;;  %v287_v20 = vpop.f32.mrb[3].mxu0 }
  0xed   : > { %v299_v21 = vmax.f32 %v285_v15, 0.0  ;;  %v288_v22 = vadd.f32 %v287_v20, %v217_v17 }
  0xee   : > { %306 = vst.msk [vmem:[%s198_s8 + $0x10] sm:$0xff] %vm303_vm2, %v301_v18  ;;  %v302_v23 = vmax.f32 %v296_v19, 0.0 }
  0xef   : > { %304 = vst.msk [vmem:[%s198_s8] sm:$0xff] %vm303_vm2, %v299_v21  ;;  %v300_v24 = vmax.f32 %v288_v22, 0.0 }
  0xf0   : > { %307 = vst.msk [vmem:[%s198_s8 + $0x18] sm:$0xff] %vm303_vm2, %v302_v23 }
  0xf1   : > { %305 = vst.msk [vmem:[%s198_s8 + $0x8] sm:$0xff] %vm303_vm2, %v300_v24 }
  0xf2 PF: > { %s13_s14 = sadd.s32 1, %s464_s14   ;;  %s548_s12 = smov %s460_s13 }
  0xf3   : > { %p10_p5 = scmp.ge.s32.totalorder %s13_s14, 4   ;;  %s549_s13 = smov %s551_s15 }
  0xf5   :  { %12 = sbr.rel (!%p10_p5) target bundleno = 2 (0x2), region = 62 }

</bundles_post_ra>
